<compile_context>
chip_gen: v5e
topology: v5e:2x2
jax: 0.10.0
libtpu: 0.0.40
codegen_flags: <defaults>
</compile_context>

<pallas_src>
import jax
import jax.numpy as jnp
from jax import lax
from jax.experimental import pallas as pl
from jax.experimental.pallas import tpu as pltpu


def _policy_kernel(cons_ref, cuts_ref,
                   w1_ref, b1_ref, w2_ref, b2_ref, w3_ref, b3_ref,
                   probs_ref):
    xc = cons_ref[...]           # (M, in_dim) f32  -- [A | b]
    xk = cuts_ref[...]           # (K, in_dim) f32  -- [A_cuts | b_cuts]

    # ---- global normalization: (x - mean) / (max - min + 1e-8) ------------
    # One pass over each block; all stats kept as (1, 1) tiles.
    n_elems = float(xc.size + xk.size)
    total = jnp.sum(xc, keepdims=True) + jnp.sum(xk, keepdims=True)   # (1, 1)
    mx = jnp.maximum(jnp.max(xc, keepdims=True), jnp.max(xk, keepdims=True))
    mn = jnp.minimum(jnp.min(xc, keepdims=True), jnp.min(xk, keepdims=True))
    mean = total * (1.0 / n_elems)                                    # (1, 1)
    inv_rng = 1.0 / (mx - mn + 1e-8)                                  # (1, 1)

    xc = (xc - mean) * inv_rng
    xk = (xk - mean) * inv_rng

    # ---- shared 3-layer MLP embed (Linear-ReLU-Linear-ReLU-Linear) --------
    w1 = w1_ref[...]; b1 = b1_ref[...]
    w2 = w2_ref[...]; b2 = b2_ref[...]
    w3 = w3_ref[...]; b3 = b3_ref[...]

    def mlp_embed(x):
        h = jnp.dot(x, w1, preferred_element_type=jnp.float32) + b1
        h = jnp.maximum(h, 0.0)
        h = jnp.dot(h, w2, preferred_element_type=jnp.float32) + b2
        h = jnp.maximum(h, 0.0)
        return jnp.dot(h, w3, preferred_element_type=jnp.float32) + b3

    c_emb = mlp_embed(xc)        # (M, out_dim)  constraints_embed
    cut_emb = mlp_embed(xk)      # (K, out_dim)  cuts_embed

    # ---- score_i = mean_j <cut_emb_i, c_emb_j> = <cut_emb_i, mean_j c_emb_j>
    c_mean = jnp.mean(c_emb, axis=0, keepdims=True)          # (1, out_dim)

    # Contract the feature axis of both operands -> (1, K), lane-dense in K.
    score = lax.dot_general(c_mean, cut_emb,
                            dimension_numbers=(((1,), (1,)), ((), ())),
                            preferred_element_type=jnp.float32)

    # ---- max-shifted softmax over the cut (lane) axis ----------------------
    score = score - jnp.max(score, axis=1, keepdims=True)
    e = jnp.exp(score)
    probs_ref[...] = e / jnp.sum(e, axis=1, keepdims=True)    # (1, K)


def policy_probs(cons_ob, cut_ob, params):
    """Categorical action probabilities over the K candidate cuts (Pallas)."""
    w1, b1, w2, b2, w3, b3 = params
    k_cuts = cut_ob.shape[0]

    vmem = pl.BlockSpec(memory_space=pltpu.MemorySpace.VMEM)
    probs = pl.pallas_call(
        _policy_kernel,
        out_shape=jax.ShapeDtypeStruct((1, k_cuts), jnp.float32),
        in_specs=[vmem] * 8,
        out_specs=vmem,
    )(cons_ob, cut_ob, w1, b1, w2, b2, w3, b3)
    return probs[0]


def policy_probs_reference(cons_ob, cut_ob, params):
    """Pure-JAX transcription of MLPAttentionPolicy.act (no sampling)."""
    w1, b1, w2, b2, w3, b3 = params
    all_ob = jnp.concatenate([cons_ob, cut_ob], axis=0)
    all_ob = (all_ob - all_ob.mean()) / (all_ob.max() - all_ob.min() + 1e-8)
    cons = all_ob[:cons_ob.shape[0], :]
    cuts = all_ob[cons_ob.shape[0]:, :]

    def mlp(x):
        h = jnp.maximum(x @ w1 + b1, 0.0)
        h = jnp.maximum(h @ w2 + b2, 0.0)
        return h @ w3 + b3

    c_emb = mlp(cons)
    cut_emb = mlp(cuts)
    att_map = cut_emb @ c_emb.T
    score = att_map.mean(axis=1)
    score = score - score.max()
    return jax.nn.softmax(score, axis=0)


def _init_linear(key, fan_in, fan_out):
    # PyTorch nn.Linear default init: U(-1/sqrt(fan_in), 1/sqrt(fan_in)).
    kw, kb = jax.random.split(key)
    bound = float(1.0 / (fan_in ** 0.5))
    w = jax.random.uniform(kw, (fan_in, fan_out), jnp.float32, -bound, bound)
    b = jax.random.uniform(kb, (1, fan_out), jnp.float32, -bound, bound)
    return w, b


if __name__ == "__main__":
    key = jax.random.PRNGKey(0)
    keys = jax.random.split(key, 8)

    # Problem sizes: M constraints, K candidate cuts, n variables.
    m, k_cuts, n = 8, 6, 15
    in_dim = n + 1                      # columns of [A | b]
    hid_dim, out_dim = 32, 16           # make_mlp(in, hid, out, nlayers=1)

    A = jax.random.normal(keys[0], (m, n), jnp.float32)
    b = jax.random.normal(keys[1], (m,), jnp.float32)
    A_cuts = jax.random.normal(keys[2], (k_cuts, n), jnp.float32)
    b_cuts = jax.random.normal(keys[3], (k_cuts,), jnp.float32)

    w1, b1 = _init_linear(keys[4], in_dim, hid_dim)
    w2, b2 = _init_linear(keys[5], hid_dim, hid_dim)
    w3, b3 = _init_linear(keys[6], out_dim and hid_dim, out_dim)

    params = (w1, b1, w2, b2, w3, b3)

    # Host-side glue: build [A|b] and [A_cuts|b_cuts] (kept as two separate,
    # tile-friendly kernel inputs).
    Ab = jnp.concatenate([A, b[:, None]], axis=1)                # (m, in_dim)
    cut_ab = jnp.concatenate([A_cuts, b_cuts[:, None]], axis=1)  # (k, in_dim)

    probs = policy_probs(Ab, cut_ab, params)
    probs = jax.block_until_ready(probs)

    # Correctness check against a pure-JAX transcription of the module.
    probs_ref = jax.block_until_ready(policy_probs_reference(Ab, cut_ab, params))
    assert probs.shape == (k_cuts,)
    assert bool(jnp.isfinite(probs).all())
    assert abs(float(jnp.sum(probs)) - 1.0) < 1e-3
    assert bool(jnp.allclose(probs, probs_ref, rtol=1e-4, atol=1e-5)), (
        probs, probs_ref)

    # Categorical(probs).sample() equivalent (deterministic key).
    # TODO(synk): .sample()/.item() of torch Categorical stays host-side JAX.
    action = int(jax.random.categorical(keys[7], jnp.log(probs)))
    assert 0 <= action < k_cuts

    print("KERNEL_OK")
</pallas_src>

<mosaic_0001>
module attributes {stable_mosaic.version = 11 : i64} {
  func.func @_policy_kernel(%arg0: memref<8x16xf32, #tpu.memory_space<vmem>>, %arg1: memref<6x16xf32, #tpu.memory_space<vmem>>, %arg2: memref<16x32xf32, #tpu.memory_space<vmem>>, %arg3: memref<1x32xf32, #tpu.memory_space<vmem>>, %arg4: memref<32x32xf32, #tpu.memory_space<vmem>>, %arg5: memref<1x32xf32, #tpu.memory_space<vmem>>, %arg6: memref<32x16xf32, #tpu.memory_space<vmem>>, %arg7: memref<1x16xf32, #tpu.memory_space<vmem>>, %arg8: memref<1x6xf32, #tpu.memory_space<vmem>>) attributes {dimension_semantics = [], scalar_prefetch = 0 : i64, scratch_operands = 0 : i64, tpu.core_type = #tpu.core_type<tc>} {
    %c0 = arith.constant 0 : index
    %c0_0 = arith.constant 0 : index
    %0 = vector.load %arg0[%c0, %c0_0] : memref<8x16xf32, #tpu.memory_space<vmem>>, vector<8x16xf32>
    %c0_1 = arith.constant 0 : index
    %c0_2 = arith.constant 0 : index
    %1 = vector.load %arg1[%c0_1, %c0_2] : memref<6x16xf32, #tpu.memory_space<vmem>>, vector<6x16xf32>
    %2 = vector.shape_cast %0 : vector<8x16xf32> to vector<1x8x16xf32>
    %cst = arith.constant dense<0.000000e+00> : vector<1xf32>
    %3 = vector.multi_reduction <add>, %2, %cst [1, 2] : vector<1x8x16xf32> to vector<1xf32>
    %4 = vector.shape_cast %3 : vector<1xf32> to vector<1x1x1xf32>
    %5 = vector.extract %4[0, 0, 0] : f32 from vector<1x1x1xf32>
    %6 = vector.broadcast %5 : f32 to vector<1x1xf32>
    %7 = vector.shape_cast %1 : vector<6x16xf32> to vector<1x6x16xf32>
    %cst_3 = arith.constant dense<0.000000e+00> : vector<1xf32>
    %8 = vector.multi_reduction <add>, %7, %cst_3 [1, 2] : vector<1x6x16xf32> to vector<1xf32>
    %9 = vector.shape_cast %8 : vector<1xf32> to vector<1x1x1xf32>
    %10 = vector.extract %9[0, 0, 0] : f32 from vector<1x1x1xf32>
    %11 = vector.broadcast %10 : f32 to vector<1x1xf32>
    %12 = arith.addf %6, %11 : vector<1x1xf32>
    %13 = vector.shape_cast %0 : vector<8x16xf32> to vector<1x8x16xf32>
    %cst_4 = arith.constant dense<0xFF800000> : vector<1xf32>
    %14 = vector.multi_reduction <maximumf>, %13, %cst_4 [1, 2] : vector<1x8x16xf32> to vector<1xf32>
    %15 = vector.shape_cast %14 : vector<1xf32> to vector<1x1x1xf32>
    %16 = vector.extract %15[0, 0, 0] : f32 from vector<1x1x1xf32>
    %17 = vector.broadcast %16 : f32 to vector<1x1xf32>
    %18 = vector.shape_cast %1 : vector<6x16xf32> to vector<1x6x16xf32>
    %cst_5 = arith.constant dense<0xFF800000> : vector<1xf32>
    %19 = vector.multi_reduction <maximumf>, %18, %cst_5 [1, 2] : vector<1x6x16xf32> to vector<1xf32>
    %20 = vector.shape_cast %19 : vector<1xf32> to vector<1x1x1xf32>
    %21 = vector.extract %20[0, 0, 0] : f32 from vector<1x1x1xf32>
    %22 = vector.broadcast %21 : f32 to vector<1x1xf32>
    %23 = arith.maximumf %17, %22 : vector<1x1xf32>
    %24 = vector.shape_cast %0 : vector<8x16xf32> to vector<1x8x16xf32>
    %cst_6 = arith.constant dense<0x7F800000> : vector<1xf32>
    %25 = vector.multi_reduction <minimumf>, %24, %cst_6 [1, 2] : vector<1x8x16xf32> to vector<1xf32>
    %26 = vector.shape_cast %25 : vector<1xf32> to vector<1x1x1xf32>
    %27 = vector.extract %26[0, 0, 0] : f32 from vector<1x1x1xf32>
    %28 = vector.broadcast %27 : f32 to vector<1x1xf32>
    %29 = vector.shape_cast %1 : vector<6x16xf32> to vector<1x6x16xf32>
    %cst_7 = arith.constant dense<0x7F800000> : vector<1xf32>
    %30 = vector.multi_reduction <minimumf>, %29, %cst_7 [1, 2] : vector<1x6x16xf32> to vector<1xf32>
    %31 = vector.shape_cast %30 : vector<1xf32> to vector<1x1x1xf32>
    %32 = vector.extract %31[0, 0, 0] : f32 from vector<1x1x1xf32>
    %33 = vector.broadcast %32 : f32 to vector<1x1xf32>
    %34 = arith.minimumf %28, %33 : vector<1x1xf32>
    %cst_8 = arith.constant 0.00446428591 : f32
    %35 = vector.broadcast %cst_8 : f32 to vector<1x1xf32>
    %36 = arith.mulf %12, %35 : vector<1x1xf32>
    %37 = arith.subf %23, %34 : vector<1x1xf32>
    %cst_9 = arith.constant 9.99999993E-9 : f32
    %38 = vector.broadcast %cst_9 : f32 to vector<1x1xf32>
    %39 = arith.addf %37, %38 : vector<1x1xf32>
    %cst_10 = arith.constant 1.000000e+00 : f32
    %40 = vector.broadcast %cst_10 : f32 to vector<1x1xf32>
    %41 = arith.divf %40, %39 : vector<1x1xf32>
    %42 = vector.broadcast %36 : vector<1x1xf32> to vector<8x16xf32>
    %43 = arith.subf %0, %42 : vector<8x16xf32>
    %44 = vector.broadcast %41 : vector<1x1xf32> to vector<8x16xf32>
    %45 = arith.mulf %43, %44 : vector<8x16xf32>
    %46 = vector.broadcast %36 : vector<1x1xf32> to vector<6x16xf32>
    %47 = arith.subf %1, %46 : vector<6x16xf32>
    %48 = vector.broadcast %41 : vector<1x1xf32> to vector<6x16xf32>
    %49 = arith.mulf %47, %48 : vector<6x16xf32>
    %c0_11 = arith.constant 0 : index
    %c0_12 = arith.constant 0 : index
    %50 = vector.load %arg2[%c0_11, %c0_12] : memref<16x32xf32, #tpu.memory_space<vmem>>, vector<16x32xf32>
    %c0_13 = arith.constant 0 : index
    %c0_14 = arith.constant 0 : index
    %51 = vector.load %arg3[%c0_13, %c0_14] : memref<1x32xf32, #tpu.memory_space<vmem>>, vector<1x32xf32>
    %c0_15 = arith.constant 0 : index
    %c0_16 = arith.constant 0 : index
    %52 = vector.load %arg4[%c0_15, %c0_16] : memref<32x32xf32, #tpu.memory_space<vmem>>, vector<32x32xf32>
    %c0_17 = arith.constant 0 : index
    %c0_18 = arith.constant 0 : index
    %53 = vector.load %arg5[%c0_17, %c0_18] : memref<1x32xf32, #tpu.memory_space<vmem>>, vector<1x32xf32>
    %c0_19 = arith.constant 0 : index
    %c0_20 = arith.constant 0 : index
    %54 = vector.load %arg6[%c0_19, %c0_20] : memref<32x16xf32, #tpu.memory_space<vmem>>, vector<32x16xf32>
    %c0_21 = arith.constant 0 : index
    %c0_22 = arith.constant 0 : index
    %55 = vector.load %arg7[%c0_21, %c0_22] : memref<1x16xf32, #tpu.memory_space<vmem>>, vector<1x16xf32>
    %cst_23 = arith.constant dense<0.000000e+00> : vector<8x32xf32>
    %56 = tpu.matmul %45, %50, %cst_23 {dimension_numbers = #tpu.dot_dimension_numbers<[1], [0], [0], [1], [0, 0, 1, 1], [], []>} : vector<8x16xf32>, vector<16x32xf32>, vector<8x32xf32> -> vector<8x32xf32>
    %57 = vector.broadcast %51 : vector<1x32xf32> to vector<8x32xf32>
    %58 = arith.addf %56, %57 : vector<8x32xf32>
    %cst_24 = arith.constant 0.000000e+00 : f32
    %59 = vector.broadcast %cst_24 : f32 to vector<8x32xf32>
    %60 = arith.maximumf %58, %59 : vector<8x32xf32>
    %cst_25 = arith.constant dense<0.000000e+00> : vector<8x32xf32>
    %61 = tpu.matmul %60, %52, %cst_25 {dimension_numbers = #tpu.dot_dimension_numbers<[1], [0], [0], [1], [0, 0, 1, 1], [], []>} : vector<8x32xf32>, vector<32x32xf32>, vector<8x32xf32> -> vector<8x32xf32>
    %62 = vector.broadcast %53 : vector<1x32xf32> to vector<8x32xf32>
    %63 = arith.addf %61, %62 : vector<8x32xf32>
    %cst_26 = arith.constant 0.000000e+00 : f32
    %64 = vector.broadcast %cst_26 : f32 to vector<8x32xf32>
    %65 = arith.maximumf %63, %64 : vector<8x32xf32>
    %cst_27 = arith.constant dense<0.000000e+00> : vector<8x16xf32>
    %66 = tpu.matmul %65, %54, %cst_27 {dimension_numbers = #tpu.dot_dimension_numbers<[1], [0], [0], [1], [0, 0, 1, 1], [], []>} : vector<8x32xf32>, vector<32x16xf32>, vector<8x16xf32> -> vector<8x16xf32>
    %67 = vector.broadcast %55 : vector<1x16xf32> to vector<8x16xf32>
    %68 = arith.addf %66, %67 : vector<8x16xf32>
    %cst_28 = arith.constant dense<0.000000e+00> : vector<6x32xf32>
    %69 = tpu.matmul %49, %50, %cst_28 {dimension_numbers = #tpu.dot_dimension_numbers<[1], [0], [0], [1], [0, 0, 1, 1], [], []>} : vector<6x16xf32>, vector<16x32xf32>, vector<6x32xf32> -> vector<6x32xf32>
    %70 = vector.broadcast %51 : vector<1x32xf32> to vector<6x32xf32>
    %71 = arith.addf %69, %70 : vector<6x32xf32>
    %cst_29 = arith.constant 0.000000e+00 : f32
    %72 = vector.broadcast %cst_29 : f32 to vector<6x32xf32>
    %73 = arith.maximumf %71, %72 : vector<6x32xf32>
    %cst_30 = arith.constant dense<0.000000e+00> : vector<6x32xf32>
    %74 = tpu.matmul %73, %52, %cst_30 {dimension_numbers = #tpu.dot_dimension_numbers<[1], [0], [0], [1], [0, 0, 1, 1], [], []>} : vector<6x32xf32>, vector<32x32xf32>, vector<6x32xf32> -> vector<6x32xf32>
    %75 = vector.broadcast %53 : vector<1x32xf32> to vector<6x32xf32>
    %76 = arith.addf %74, %75 : vector<6x32xf32>
    %cst_31 = arith.constant 0.000000e+00 : f32
    %77 = vector.broadcast %cst_31 : f32 to vector<6x32xf32>
    %78 = arith.maximumf %76, %77 : vector<6x32xf32>
    %cst_32 = arith.constant dense<0.000000e+00> : vector<6x16xf32>
    %79 = tpu.matmul %78, %54, %cst_32 {dimension_numbers = #tpu.dot_dimension_numbers<[1], [0], [0], [1], [0, 0, 1, 1], [], []>} : vector<6x32xf32>, vector<32x16xf32>, vector<6x16xf32> -> vector<6x16xf32>
    %80 = vector.broadcast %55 : vector<1x16xf32> to vector<6x16xf32>
    %81 = arith.addf %79, %80 : vector<6x16xf32>
    %cst_33 = arith.constant dense<0.000000e+00> : vector<16xf32>
    %82 = vector.multi_reduction <add>, %68, %cst_33 [0] : vector<8x16xf32> to vector<16xf32>
    %83 = vector.shape_cast %82 : vector<16xf32> to vector<1x16xf32>
    %cst_34 = arith.constant 8.000000e+00 : f32
    %84 = vector.broadcast %cst_34 : f32 to vector<1x16xf32>
    %85 = arith.divf %83, %84 : vector<1x16xf32>
    %cst_35 = arith.constant dense<0.000000e+00> : vector<1x6xf32>
    %86 = tpu.matmul %85, %81, %cst_35 {dimension_numbers = #tpu.dot_dimension_numbers<[1], [1], [0], [0], [0, 0, 1, 0], [], []>} : vector<1x16xf32>, vector<6x16xf32>, vector<1x6xf32> -> vector<1x6xf32>
    %cst_36 = arith.constant dense<0xFF800000> : vector<1xf32>
    %87 = vector.multi_reduction <maximumf>, %86, %cst_36 [1] : vector<1x6xf32> to vector<1xf32>
    %88 = vector.shape_cast %87 : vector<1xf32> to vector<1x1xf32>
    %89 = vector.broadcast %88 : vector<1x1xf32> to vector<1x6xf32>
    %90 = arith.subf %86, %89 : vector<1x6xf32>
    %91 = math.exp %90 : vector<1x6xf32>
    %cst_37 = arith.constant dense<0.000000e+00> : vector<1xf32>
    %92 = vector.multi_reduction <add>, %91, %cst_37 [1] : vector<1x6xf32> to vector<1xf32>
    %93 = vector.shape_cast %92 : vector<1xf32> to vector<1x1xf32>
    %94 = vector.broadcast %93 : vector<1x1xf32> to vector<1x6xf32>
    %95 = arith.divf %91, %94 : vector<1x6xf32>
    %c0_38 = arith.constant 0 : index
    %c0_39 = arith.constant 0 : index
    %96 = vector.load %arg8[%c0_38, %c0_39] : memref<1x6xf32, #tpu.memory_space<vmem>>, vector<1x6xf32>
    tpu.vector_store %arg8[%c0_38, %c0_39], %95 {strides = array<i32>} : memref<1x6xf32, #tpu.memory_space<vmem>>, vector<1x6xf32>,
    return
  }
}

</mosaic_0001>

<bundles_post_ra>
// kernel: tpu_custom_call.1
= control target key start
LH: loop header
LB: loop body
LE: loop exit
PB: predicated region body
PF: predicated region fallthrough
CT: control target
= control target key end

     0   :  { %13 = vsyncpa [#allocation3], 0  ;;  %s640_s0 = inlined_call_operand.hbm [shape: f32[8,16], index: 0, kind: input, shape index: {}]   ;;  %s641_s1 = inlined_call_operand.hbm [shape: f32[6,16], index: 1, kind: input, shape index: {}]   ;;  %s642_s2 = inlined_call_operand.vmem [shape: f32[16,32], index: 2, kind: input, shape index: {}]   ;;  %s643_s3 = inlined_call_operand.vmem [shape: f32[1,32], index: 3, kind: input, shape index: {}]   ;;  %s644_s4 = inlined_call_operand.vmem [shape: f32[32,32], index: 4, kind: input, shape index: {}]   ;;  %s645_s5 = inlined_call_operand.vmem [shape: f32[1,32], index: 5, kind: input, shape index: {}]   ;;  %s646_s6 = inlined_call_operand.vmem [shape: f32[32,16], index: 6, kind: input, shape index: {}]   ;;  %s647_s7 = inlined_call_operand.vmem [shape: f32[1,16], index: 7, kind: input, shape index: {}]   ;;  %s648_s8 = inlined_call_operand.hbm [shape: f32[1,6], index: 8, kind: output, shape index: {}]  }
   0x1   :  { %14 = vsyncpa [#allocation6], 0 }
   0x2   :  { %15 = vsyncpa [#allocation4], 0  ;;  %s21_s29 = sshll.u32 %s640_s0, 4  ;;  %s516_s30 = smov [#allocation2]   ;;  %s22_s29 = int_to_ptr.hbm [resolvable:$true] %s21_s29 }
   0x3   :  { %s23_s9 = sshll.u32 %s516_s30, 4  ;;  %s32_s12 = sshll.u32 %s641_s1, 4  ;;  %s24_s9 = int_to_ptr.vmem [resolvable:$true] %s23_s9  ;;  %s33_s12 = int_to_ptr.hbm [resolvable:$true] %s32_s12 }
   0x4   :  { %26 = dma.hbm_to_vmem [thread:$0]  %s22_s29, 128, %s24_s9, [#allocation3]  }
   0x5   :  { %s517_s13 = smov [#allocation5]  }
   0x6   :  { %s34_s14 = sshll.u32 %s517_s13, 4  ;;  %s35_s14 = int_to_ptr.vmem [resolvable:$true] %s34_s14 }
   0x7   :  { %37 = dma.hbm_to_vmem [thread:$0]  %s33_s12, 128, %s35_s14, [#allocation6]  }
   0x8   :  { %510 = dma.done.wait [#allocation3], 128  }
   0x9   :  { %511 = vsyncadd [#allocation3], 4294967168 }
   0xa   :  { %512 = dma.done.wait [#allocation6], 128  }
   0xb   :  { %513 = vsyncadd [#allocation6], 4294967168  ;;  %vm60_vm0 = vcmask 130048   ;;  %v571_v0 = vld [vmem:[#allocation2] sm:$0xff]  ;;  %v579_v4 = vld [vmem:[#allocation5] sm:$0x3f] }
   0xc   :  { %v108_v1 = vsel %vm60_vm0, %v571_v0, inf  ;;  %v85_v2 = vsel %vm60_vm0, %v571_v0, -inf  ;;  %v61_v3 = vsel %vm60_vm0, %v571_v0, 0.0  ;;  %vm72_vm1 = vcmask 128000   ;;  %v154_v50 = vld [vmem:[%s642_s2 + $0x8] sm:$0xff]  ;;  %v153_v51 = vld [vmem:[%s642_s2] sm:$0xff] }
   0xd   :  { %109 = vmin.xlane.f32.xlu2 %v108_v1  ;;  %86 = vmax.xlane.f32.xlu1 %v85_v2  ;;  %v119_v5 = vsel %vm72_vm1, %v579_v4, inf  ;;  %v96_v6 = vsel %vm72_vm1, %v579_v4, -inf  ;;  %v73_v7 = vsel %vm72_vm1, %v579_v4, 0.0  ;;  %v159_v52 = vld [vmem:[%s644_s4 + $0x18] sm:$0xff]  ;;  %vm196_vm6 = vcmask 261120   ;;  %s392_s19 = sshll.u32 %s648_s8, 4  ;;  %s393_s19 = int_to_ptr.hbm [resolvable:$true] %s392_s19 }
   0xe   :  { %62 = vadd.xlane.f32.xlu0 %v61_v3  ;;  %186 = vmatpush.msra.mxu0 %v154_v50  ;;  %vm359_vm8 = vcmask 40960  }
   0xf   :  { %264 = vmatpush.msra.mxu3 %v154_v50  ;;  %212 = vmatpush.msra.mxu1 %v159_v52 }
  0x10   :  { %187 = vmatpush.msra.mxu0 %v153_v51 }
  0x11   :  { %265 = vmatpush.msra.mxu3 %v153_v51 }
  0x12   :  { %286 = vmatpush.msrb.mxu0 %v159_v52 }
  0x15   :  { %120 = vmin.xlane.f32.xlu2 %v119_v5  ;;  %97 = vmax.xlane.f32.xlu1 %v96_v6 }
  0x16   :  { %74 = vadd.xlane.f32.xlu0 %v73_v7 }
  0x80   :  { %v110_v8 = vpop.xlane.xlu2 %109  ;;  %v87_v9 = vpop.xlane.xlu1 %86 }
  0x81   :  { %v88_v10 = vrot.slane %v87_v9, 4  ;;  %v63_v11 = vpop.xlane.xlu0 %62  ;;  %v111_v13 = vrot.slane %v110_v8, 4 }
  0x82   :  { %v64_v12 = vrot.slane %v63_v11, 4 }
  0x83   :  { %v89_v15 = vmax.f32 %v87_v9, %v88_v10  ;;  %v112_v17 = vmin.f32 %v110_v8, %v111_v13 }
  0x84   :  { %v65_v14 = vadd.f32 %v64_v12, %v63_v11 }
  0x85   :  { %v90_v21 = vrot.slane %v89_v15, 2  ;;  %v113_v27 = vrot.slane %v112_v17, 2 }
  0x86   :  { %v66_v16 = vrot.slane %v65_v14, 2 }
  0x87   :  { %v91_v34 = vmax.f32 %v89_v15, %v90_v21  ;;  %v114_v38 = vmin.f32 %v112_v17, %v113_v27  ;;  %v158_v17 = vld [vmem:[%s644_s4 + $0x10] sm:$0xff]  ;;  %v162_v27 = vld [vmem:[%s646_s6 + $0x8] sm:$0xff] }
  0x88   :  { %v121_v18 = vpop.xlane.xlu2 %120  ;;  %v98_v19 = vpop.xlane.xlu1 %97  ;;  %v67_v20 = vadd.f32 %v66_v16, %v65_v14  ;;  %213 = vmatpush.msra.mxu1 %v158_v17  ;;  %287 = vmatpush.msrb.mxu0 %v158_v17 }
  0x89   :  { %v122_v22 = vrot.slane %v121_v18, 4  ;;  %v99_v23 = vrot.slane %v98_v19, 4  ;;  %v75_v24 = vpop.xlane.xlu0 %74  ;;  %v92_v40 = vrot.slane %v91_v34, 1  ;;  %v115_v44 = vrot.slane %v114_v38, 1 }
  0x8a   :  { %v76_v25 = vrot.slane %v75_v24, 4  ;;  %v68_v26 = vrot.slane %v67_v20, 1 }
  0x8b   :  { %v123_v28 = vmin.f32 %v121_v18, %v122_v22  ;;  %v100_v29 = vmax.f32 %v98_v19, %v99_v23  ;;  %v93_v47 = vmax.f32 %v91_v34, %v92_v40  ;;  %v116_v49 = vmin.f32 %v114_v38, %v115_v44  ;;  %v164_v18 = vld [vmem:[%s646_s6 + $0x18] sm:$0xff]  ;;  %v427_v19 = vld [vmem:[%s643_s3] ss:$0 sm:$0xff] }
  0x8c   :  { %v77_v30 = vadd.f32 %v76_v25, %v75_v24  ;;  %v69_v31 = vadd.f32 %v68_v26, %v67_v20  ;;  %239 = vmatpush.msra.mxu2 %v164_v18  ;;  %310 = vmatpush.msrb.mxu3 %v164_v18  ;;  %v163_v26 = vld [vmem:[%s646_s6 + $0x10] sm:$0xff]  ;;  %v429_v38 = vld [vmem:[%s647_s7] ss:$0 sm:$0xff] }
  0x8d   :  { %v124_v32 = vrot.slane %v123_v28, 2  ;;  %v101_v33 = vrot.slane %v100_v29, 2 }
  0x8e   :  { %v78_v35 = vrot.slane %v77_v30, 2  ;;  %411 = vpush %v69_v31  ;;  %240 = vmatpush.msra.mxu2 %v163_v26  ;;  %311 = vmatpush.msrb.mxu3 %v163_v26 }
  0x8f   :  { %v125_v36 = vmin.f32 %v123_v28, %v124_v32  ;;  %v102_v37 = vmax.f32 %v100_v29, %v101_v33  ;;  %v161_v28 = vld [vmem:[%s646_s6] sm:$0xff] }
  0x90   :  { %v79_v39 = vadd.f32 %v78_v35, %v77_v30  ;;  %241 = vmatpush.msra.mxu2 %v162_v27  ;;  %312 = vmatpush.msrb.mxu3 %v162_v27  ;;  %v428_v29 = vld [vmem:[%s645_s5] ss:$0 sm:$0xff]  ;;  %s519_s5 = smov [#allocation7]  }
  0x91   :  { %v103_v41 = vrot.slane %v102_v37, 1  ;;  %v126_v43 = vrot.slane %v125_v36, 1  ;;  %s390_s7 = sshll.u32 %s519_s5, 4  ;;  %s391_s7 = int_to_ptr.vmem [resolvable:$true] %s390_s7 }
  0x92   :  { %v80_v42 = vrot.slane %v79_v39, 1  ;;  %242 = vmatpush.msra.mxu2 %v161_v28  ;;  %313 = vmatpush.msrb.mxu3 %v161_v28 }
  0x93   :  { %v104_v46 = vmax.f32 %v102_v37, %v103_v41  ;;  %v127_v48 = vmin.f32 %v125_v36, %v126_v43  ;;  %v518_v36 = vmov 8.0  }
  0x94   :  { %v81_v45 = vadd.f32 %v80_v42, %v79_v39 }
  0x96   :  { %413 = vpush %v81_v45 }
  0x97   :  { %415 = vpush %v93_v47 }
  0x98   :  { %417 = vpush %v104_v46 }
  0x99   :  { %419 = vpush %v116_v49 }
  0x9a   :  { %421 = vpush %v127_v48 }
  0xbf   :  { %s412_s17 = spop %411 }
  0xc0   :  { %v71_v63 = vstv %s412_s17 }
  0xc7   :  { %s414_s20 = spop %413 }
  0xc8   :  { %s416_s21 = spop %415  ;;  %v83_v61 = vstv %s414_s20 }
  0xc9   :  { %v95_v53 = vstv %s416_s21  ;;  %s418_s22 = spop %417  ;;  %v84_v1 = vadd.f32 %v83_v61, %v71_v63 }
  0xca   :  { %v106_v54 = vstv %s418_s22  ;;  %s420_s23 = spop %419 }
  0xcb   :  { %v107_v55 = vmax.f32 %v95_v53, %v106_v54  ;;  %v118_v56 = vstv %s420_s23  ;;  %s422_s2 = spop %421  ;;  %v131_v6 = vmul.f32 0.004464286, %v84_v1 }
  0xcc   :  { %v129_v57 = vstv %s422_s2 }
  0xcd   :  { %v130_v58 = vmin.f32 %v118_v56, %v129_v57  ;;  %v149_v11 = vsub.f32 %v571_v0, %v131_v6  ;;  %v151_v12 = vsub.f32 %v579_v4, %v131_v6  ;;  %v157_v0 = vld [vmem:[%s644_s4 + $0x8] sm:$0xff]  ;;  %v156_v4 = vld [vmem:[%s644_s4] sm:$0xff] }
  0xce   :  { %214 = vmatpush.msra.mxu1 %v157_v0  ;;  %288 = vmatpush.msrb.mxu0 %v157_v0 }
  0xcf   :  { %v132_v59 = vsub.f32 %v107_v55, %v130_v58 }
  0xd0   :  { %215 = vmatpush.msra.mxu1 %v156_v4  ;;  %289 = vmatpush.msrb.mxu0 %v156_v4 }
  0xd1   :  { %v133_v60 = vadd.f32 1e-08, %v132_v59 }
  0xd3   :  { %430 = vrcp.f32 %v133_v60  ;;  %v145_v5 = vand.u32 2147483648, %v133_v60  ;;  %v143_v8 = vand.u32 2147483647, %v133_v60  ;;  %vm139_vm3 = vweird.f32 %v133_v60 }
  0xd4   :  { %432 = vrcp.f32 %v518_v36 }
  0xd5   :  { %v146_v10 = vor.u32 1.1754944e-38, %v145_v5  ;;  %vm144_vm5 = vcmp.eq.f32.partialorder %v143_v8, 8.507059e+37 }
  0xd9   :  { %v431_v62 = vpop.eup %430 }
  0xda   :  { %v135_v2 = vmul.f32 %v431_v62, %v133_v60  ;;  %vm140_vm2 = vweird.f32 %v431_v62  ;;  %v433_v37 = vpop.eup %432 }
  0xdb   :  { %vm141_vm4 = vmor %vm139_vm3, %vm140_vm2  ;;  %v326_v39 = vmul.f32 8.0, %v433_v37  ;;  %vm330_vm7 = vweird.f32 %v433_v37 }
  0xdc   :  { %v136_v3 = vsub.f32 1.0, %v135_v2 }
  0xdd   :  { %v327_v42 = vsub.f32 1.0, %v326_v39 }
  0xde   :  { %v137_v7 = vmul.f32 %v431_v62, %v136_v3 }
  0xdf   :  { %v328_v45 = vmul.f32 %v433_v37, %v327_v42 }
  0xe0   :  { %v138_v9 = vadd.f32 %v431_v62, %v137_v7 }
  0xe1   :  { %v329_v50 = vadd.f32 %v433_v37, %v328_v45 }
  0xe2   :  { %v142_v13 = vsel %vm141_vm4, %v431_v62, %v138_v9 }
  0xe3   :  { %v147_v14 = vsel %vm144_vm5, %v146_v10, %v142_v13  ;;  %v331_v53 = vsel %vm330_vm7, %v433_v37, %v329_v50 }
  0xe4   :  { %v150_v15 = vmul.f32 %v149_v11, %v147_v14  ;;  %v152_v16 = vmul.f32 %v151_v12, %v147_v14 }
  0xe6   :  { %403 = vmatmul.msk.f32.vlgmr.msra.gmra.mxu0 %vm60_vm0, %v150_v15  ;;  %406 = vmatmul.msk.f32.vlgmr.msra.gmra.mxu3 %vm60_vm0, %v152_v16 }
 0x163   :  { %v189_v20 = vpop.f32.mrf.mxu0 }
 0x164   :  { %v190_v21 = vadd.f32 %v427_v19, %v189_v20 }
 0x166   :  { %v192_v22 = vmax.f32 %v190_v21, 0.0 }
 0x168   :  { %404 = vmatmul.msk.f32.vlgmr.msra.gmra.mxu1 %vm196_vm6, %v192_v22 }
 0x169   :  { %v267_v23 = vpop.f32.mrf.mxu3 }
 0x16a   :  { %v268_v24 = vadd.f32 %v427_v19, %v267_v23 }
 0x16c   :  { %v270_v25 = vmax.f32 %v268_v24, 0.0 }
 0x16e   :  { %407 = vmatmul.msk.f32.vlgmr.msrb.gmra.mxu0 %vm196_vm6, %v270_v25 }
 0x1e5   :  { %v217_v30 = vpop.f32.mrf.mxu1 }
 0x1e6   :  { %v218_v31 = vadd.f32 %v428_v29, %v217_v30 }
 0x1e8   :  { %v220_v32 = vmax.f32 %v218_v31, 0.0 }
 0x1ea   :  { %405 = vmatmul.msk.f32.vlgmr.msra.gmra.mxu2 %vm196_vm6, %v220_v32 }
 0x1eb   :  { %v291_v33 = vpop.f32.mrf.mxu0 }
 0x1ec   :  { %v292_v34 = vadd.f32 %v428_v29, %v291_v33 }
 0x1ee   :  { %v294_v35 = vmax.f32 %v292_v34, 0.0 }
 0x1f0   :  { %408 = vmatmul.msk.f32.vlgmr.msrb.gmra.mxu3 %vm196_vm6, %v294_v35 }
 0x26d   :  { %v244_v40 = vpop.f32.mrf.mxu2 }
 0x26e   :  { %v245_v41 = vadd.f32 %v429_v38, %v244_v40 }
 0x270   :  { %v318_v43 = vsel %vm60_vm0, %v245_v41, 0.0 }
 0x271   :  { %v319_v44 = vrot.slane %v318_v43, 4 }
 0x273   :  { %v320_v46 = vadd.f32 %v319_v44, %v318_v43  ;;  %v315_v47 = vpop.f32.mrf.mxu3 }
 0x274   :  { %v316_v48 = vadd.f32 %v429_v38, %v315_v47 }
 0x275   :  { %v321_v49 = vrot.slane %v320_v46, 2 }
 0x276   :  { %409 = vmatpush.xpose.msk.msrb.mxu1 %vm60_vm0, %v316_v48 }
 0x277   :  { %v322_v51 = vadd.f32 %v321_v49, %v320_v46 }
 0x279   :  { %v323_v52 = vrot.slane %v322_v51, 1 }
 0x27b   :  { %v324_v54 = vadd.f32 %v323_v52, %v322_v51 }
 0x27d   :  { %v332_v55 = vmul.f32 %v331_v53, %v324_v54 }
 0x27f   :  { %410 = vmatmul.msk.f32.vlgmr.msrb.gmra.mxu1 %vm60_vm0, %v332_v55 }
 0x2fc   :  { %v356_v56 = vpop.f32.mrf.mxu1 }
 0x2fd   :  { %v360_v57 = vsel %vm359_vm8, %v356_v56, -inf }
 0x2fe   :  { %361 = vmax.xlane.f32.xlu0 %v360_v57 }
 0x371   :  { %v362_v58 = vpop.xlane.xlu0 %361 }
 0x372   :  { %v363_v59 = vsub.f32 %v356_v56, %v362_v58 }
 0x374   :  { %v364_v60 = vmul.f32 1.442695, %v363_v59 }
 0x376   :  { %434 = vpow2.f32 %v364_v60 }
 0x37c   :  { %v435_v61 = vpop.eup %434 }
 0x37d   :  { %v366_v62 = vsel %vm359_vm8, %v435_v61, 0.0 }
 0x37e   :  { %367 = vadd.xlane.f32.xlu1 %v366_v62 }
 0x3f1   :  { %v368_v63 = vpop.xlane.xlu1 %367 }
 0x3f2   :  { %436 = vrcp.f32 %v368_v63  ;;  %v380_v5 = vand.u32 2147483648, %v368_v63  ;;  %v378_v7 = vand.u32 2147483647, %v368_v63  ;;  %vm374_vm10 = vweird.f32 %v368_v63 }
 0x3f4   :  { %v381_v9 = vor.u32 1.1754944e-38, %v380_v5  ;;  %vm379_vm12 = vcmp.eq.f32.partialorder %v378_v7, 8.507059e+37 }
 0x3f8   :  { %v437_v1 = vpop.eup %436 }
 0x3f9   :  { %v370_v2 = vmul.f32 %v437_v1, %v368_v63  ;;  %vm375_vm9 = vweird.f32 %v437_v1 }
 0x3fa   :  { %vm376_vm11 = vmor %vm374_vm10, %vm375_vm9 }
 0x3fb   :  { %v371_v3 = vsub.f32 1.0, %v370_v2 }
 0x3fd   :  { %v372_v6 = vmul.f32 %v437_v1, %v371_v3 }
 0x3ff   :  { %v373_v8 = vadd.f32 %v437_v1, %v372_v6 }
 0x401   :  { %v377_v10 = vsel %vm376_vm11, %v437_v1, %v373_v8 }
 0x402   :  { %v382_v11 = vsel %vm379_vm12, %v381_v9, %v377_v10 }
 0x403   :  { %v383_v12 = vmul.f32 %v435_v61, %v382_v11 }
 0x405   :  { %384 = vst.msk [vmem:[#allocation7] sm:$0x1] %vm359_vm8, %v383_v12 }
 0x406   :  { %395 = dma.vmem_to_hbm [thread:$0]  %s391_s7, 16, %s393_s19, [#allocation4]  }
 0x407   :  { %514 = dma.done.wait [#allocation4], 16  }
 0x408   :  { %515 = vsyncadd [#allocation4], 4294967280 }
 0x409   :  { %400 = vsyncpa [#allocation3], 1 }
 0x40a   :  { %401 = vsyncpa [#allocation6], 1 }
 0x40b   :  { %402 = vsyncpa [#allocation4], 1 }

</bundles_post_ra>
